<compile_context>
chip_gen: v6e
topology: v6e:2x2x1
jax: 0.10.0
libtpu: 0.0.40
codegen_flags: <defaults>
</compile_context>

<pallas_src>
import jax
import jax.numpy as jnp
from jax.experimental import pallas as pl
from jax.experimental.pallas import tpu as pltpu

_LANE = 512          # lane axis = 4 x 128 -> full vregs, unmasked stores
_ROW_TILE = 2048     # (2048, 512) f32 = 4 MiB per buffer


def _div_kernel(x_ref, o_ref):
    x = x_ref[...]
    y = x / x                                    # NaN at 0 / +-inf (matches torch x/x)
    o_ref[...] = (y * 0.5).astype(o_ref.dtype)   # exact: /2 == *0.5 for floats


def _choose_row_tile(rows):
    """Pick a row-tile: full extent for tiny inputs, >=2 tiles otherwise."""
    if rows <= 16:
        return rows                              # full-extent block (legal for any rows)
    half = -(-rows // 2)                         # cdiv(rows, 2)
    half = -(-half // 8) * 8                     # round up to a multiple of 8
    return min(_ROW_TILE, half)


def _pallas_div_2d(x2d, tr, donate_input):
    rows, lane = x2d.shape
    grid = (pl.cdiv(rows, tr),)                  # last block may be ragged; Pallas
                                                 # pads reads and masks OOB writeback
    kwargs = {}
    if donate_input:
        kwargs["input_output_aliases"] = {0: 0}  # elementwise 1:1 -> safe to alias
    return pl.pallas_call(
        _div_kernel,
        out_shape=jax.ShapeDtypeStruct((rows, lane), x2d.dtype),
        grid=grid,
        in_specs=[pl.BlockSpec((tr, lane), lambda i: (i, 0))],
        out_specs=pl.BlockSpec((tr, lane), lambda i: (i, 0)),
        compiler_params=pltpu.CompilerParams(
            dimension_semantics=("parallel",),   # shard row tiles across v7x's 2 TCs
            vmem_limit_bytes=32 * 1024 * 1024,   # headroom for 4 x 4 MiB buffers (v5e)
        ),
        **kwargs,
    )(x2d)


def div_forward(x, donate_input=False):
    """Applies (x / x) / 2 elementwise via a Pallas TPU kernel.

    Accepts any-rank array (integers are promoted to float32, matching torch
    true division); returns the same shape.
    """
    if x.size == 0:
        return x

    orig_shape = x.shape
    if not jnp.issubdtype(x.dtype, jnp.floating):
        x = x.astype(jnp.float32)
    dtype = x.dtype

    flat = x.reshape(-1)
    n = flat.shape[0]

    rows = n // _LANE
    n_main = rows * _LANE
    tail = n - n_main

    if rows == 0:
        # Too small to fill one lane-dense row: plain jnp (negligible cost).
        out_flat = (flat / flat) * jnp.asarray(0.5, dtype)
        return out_flat.reshape(orig_shape)

    tr = _choose_row_tile(rows)
    main_out = _pallas_div_2d(
        flat[:n_main].reshape(rows, _LANE), tr, donate_input
    ).reshape(-1)

    if tail:
        # Sub-512-element tail computed outside the kernel -- avoids any
        # full-tensor pad / slice pass over HBM.
        t = flat[n_main:]
        tail_out = (t / t) * jnp.asarray(0.5, dtype)
        out_flat = jnp.concatenate([main_out, tail_out])
    else:
        out_flat = main_out

    return out_flat.reshape(orig_shape)


if __name__ == "__main__":
    key = jax.random.PRNGKey(0)
    # Small NCHW input consistent with a typical conv-style tensor.
    x = jax.random.normal(key, (2, 4, 16, 16), dtype=jnp.float32)

    y = jax.jit(div_forward)(x)
    y = jax.block_until_ready(y)

    # Reference in plain JAX (same semantics as torch: (x/x)/2).
    y_ref = (x / x) / 2.0
    assert y.shape == x.shape and y.dtype == x.dtype
    assert jnp.allclose(y, y_ref, equal_nan=True)

    print("KERNEL_OK")
</pallas_src>

<mosaic_0001>
module attributes {stable_mosaic.version = 11 : i64} {
  func.func @_div_kernel(%arg0: i32, %arg1: memref<4x512xf32, #tpu.memory_space<vmem>>, %arg2: memref<4x512xf32, #tpu.memory_space<vmem>>) attributes {dimension_semantics = [#tpu.dimension_semantics<parallel>], iteration_bounds = array<i64: 1>, scalar_prefetch = 0 : i64, scratch_operands = 0 : i64, tpu.core_type = #tpu.core_type<tc>, window_params = [{transform_indices = @transform_0, window_bounds = array<i64: 4, 512>}, {transform_indices = @transform_1, window_bounds = array<i64: 4, 512>}]} {
    %c0 = arith.constant 0 : index
    %c0_0 = arith.constant 0 : index
    %0 = vector.load %arg1[%c0, %c0_0] : memref<4x512xf32, #tpu.memory_space<vmem>>, vector<4x512xf32>
    %1 = arith.divf %0, %0 : vector<4x512xf32>
    %cst = arith.constant 5.000000e-01 : f32
    %2 = vector.broadcast %cst : f32 to vector<4x512xf32>
    %3 = arith.mulf %1, %2 : vector<4x512xf32>
    %c0_1 = arith.constant 0 : index
    %c0_2 = arith.constant 0 : index
    %4 = vector.load %arg2[%c0_1, %c0_2] : memref<4x512xf32, #tpu.memory_space<vmem>>, vector<4x512xf32>
    tpu.vector_store %arg2[%c0_1, %c0_2], %3 {strides = array<i32>} : memref<4x512xf32, #tpu.memory_space<vmem>>, vector<4x512xf32>,
    return
  }
  func.func @transform_0(%arg0: i32) -> (i32, i32) {
    %c0_i32 = arith.constant 0 : i32
    %c0_i32_0 = arith.constant 0 : i32
    return %arg0, %c0_i32 : i32, i32
  }
  func.func @transform_1(%arg0: i32) -> (i32, i32) {
    %c0_i32 = arith.constant 0 : i32
    %c0_i32_0 = arith.constant 0 : i32
    return %arg0, %c0_i32 : i32, i32
  }
}

</mosaic_0001>

<bundles_post_ra>
// kernel: div_forward.1
= control target key start
LH: loop header
LB: loop body
LE: loop exit
PB: predicated region body
PF: predicated region fallthrough
CT: control target
= control target key end

     0   :  { %s48_s0 = inlined_call_operand.vmem [shape: f32[4,512], index: 0, kind: input, shape index: {}]   ;;  %s49_s1 = inlined_call_operand.vmem [shape: f32[4,512], index: 1, kind: output, shape index: {}]  }
   0x1   :  { %v8_v0 = vld [vmem:[%s48_s0] sm:$0xff]  ;;  %v9_v1 = vld [vmem:[%s48_s0 + $0x8] sm:$0xff] }
   0x2   :  { %22 = vrcp.f32 %v8_v0 }
   0x3   :  { %24 = vrcp.f32 %v9_v1 }
   0xf   :  { %v23_v2 = vpop.eup %22 }
  0x10   :  { %v25_v3 = vpop.eup %24  ;;  %v11_v4 = vmul.f32 %v23_v2, %v8_v0 }
  0x11   :  { %v13_v5 = vmul.f32 %v25_v3, %v9_v1 }
  0x12   :  { %v14_v6 = vmul.f32 0.5, %v11_v4 }
  0x13   :  { %v15_v7 = vmul.f32 0.5, %v13_v5 }
  0x14   :  { %16 = vst [vmem:[%s49_s1] sm:$0xff] %v14_v6 }
  0x15   :  { %17 = vst [vmem:[%s49_s1 + $0x8] sm:$0xff] %v15_v7 }

</bundles_post_ra>
